<compile_context>
chip_gen: v5e
topology: v5e:2x2
jax: 0.10.0
libtpu: 0.0.40
codegen_flags: <defaults>
</compile_context>

<pallas_src>
import functools

import jax
import jax.numpy as jnp
from jax.experimental import pallas as pl
from jax.experimental.pallas import tpu as pltpu


def _linear_kernel_inplace(x_ref, wt_ref, b_ref, o_ref, *, activation, cast_bf16):
    """float32-output path: accumulate directly into the resident output block."""
    # x_ref : (tm, tk) VMEM     input tile
    # wt_ref: (tk, tn) VMEM     pre-transposed weight tile (n_in, n_out layout)
    # b_ref : (1,  tn) VMEM     bias slice for this N block
    # o_ref : (tm, tn) VMEM f32 output tile (resident across the K axis)
    k = pl.program_id(2)

    @pl.when(k == 0)
    def _():
        # Fold the bias add into the accumulator init (hoisted out of the K loop).
        o_ref[...] = jnp.broadcast_to(b_ref[...], o_ref.shape)

    lhs = x_ref[...]
    rhs = wt_ref[...]
    if cast_bf16:
        lhs = lhs.astype(jnp.bfloat16)
        rhs = rhs.astype(jnp.bfloat16)
    o_ref[...] += jnp.dot(lhs, rhs, preferred_element_type=jnp.float32)

    if activation is not None:
        @pl.when(k == pl.num_programs(2) - 1)
        def _():
            o_ref[...] = activation(o_ref[...])


def _linear_kernel_scratch(x_ref, wt_ref, b_ref, o_ref, acc_ref, *,
                           activation, cast_bf16):
    """General path (non-f32 outputs): f32 VMEM accumulator, cast on the last step."""
    k = pl.program_id(2)

    @pl.when(k == 0)
    def _():
        acc_ref[...] = jnp.broadcast_to(
            b_ref[...].astype(jnp.float32), acc_ref.shape)

    lhs = x_ref[...]
    rhs = wt_ref[...]
    if cast_bf16:
        lhs = lhs.astype(jnp.bfloat16)
        rhs = rhs.astype(jnp.bfloat16)
    acc_ref[...] += jnp.dot(lhs, rhs, preferred_element_type=jnp.float32)

    @pl.when(k == pl.num_programs(2) - 1)
    def _():
        res = acc_ref[...]
        if activation is not None:
            res = activation(res)
        o_ref[...] = res.astype(o_ref.dtype)


def _round_up(x, m):
    return ((x + m - 1) // m) * m


def _largest_divisor_tile(dim, cap, align):
    """Largest multiple of `align` that divides `dim` and is <= cap.

    `dim` must already be a multiple of `align`, so `align` always works as a
    fallback and no extra padding beyond the alignment pad is ever required.
    """
    cap = min(cap, dim)
    t = (cap // align) * align
    while t > align:
        if dim % t == 0:
            return t
        t -= align
    return align


def pallas_layer(x, w, b, activation=None, *, use_bf16_matmul=False):
    """Forward pass of the PyTorch `layer` module: y = x @ W^T + b, then activation.

    x: (B, n_in)
    w: (n_out, n_in)   PyTorch nn.Linear weight layout
    b: (n_out,)
    activation: optional *elementwise* jnp function applied inside the kernel.
    use_bf16_matmul: cast MXU operands to bf16 (f32 accumulate). Faster on v6e/v7x
                     but a numerics trade-off vs. the f32 PyTorch reference.
    """
    B, n_in = x.shape
    n_out, n_in_w = w.shape
    assert n_in_w == n_in, "weight / input feature mismatch"

    # One-time transpose of the PyTorch-layout weight to (n_in, n_out) so the kernel
    # performs a plain (tm,tk)@(tk,tn) contraction on the MXU.
    wt = w.T

    # Pad only to hardware alignment (8 sublanes on M, 128 lanes on K/N).
    B_p = _round_up(B, 8)
    K_p = _round_up(n_in, 128)
    N_p = _round_up(n_out, 128)

    # Tiles = largest exact divisors of the padded dims under generation-safe caps.
    # Worst-case double-buffered footprint (512, 512, 1024 f32) ~= 10-11 MiB.
    tm = _largest_divisor_tile(B_p, 512, 8)
    tn = _largest_divisor_tile(N_p, 512, 128)
    tk = _largest_divisor_tile(K_p, 1024, 128)

    # Megacore (v7x has 2 TensorCores): keep >= 2 blocks on a parallel axis when the
    # upsized tiles would otherwise collapse the M x N grid to a single block.
    if B_p // tm == 1 and N_p // tn == 1:
        if tm >= 256 and (tm // 2) % 8 == 0:
            tm //= 2
        elif tn >= 256 and (tn // 2) % 128 == 0:
            tn //= 2

    # Alignment padding only (zeros along K contribute nothing to the dot; padded
    # M rows / N cols are sliced off afterwards).
    x_p = x if (B_p == B and K_p == n_in) else jnp.pad(
        x, ((0, B_p - B), (0, K_p - n_in)))
    wt_p = wt if (K_p == n_in and N_p == n_out) else jnp.pad(
        wt, ((0, K_p - n_in), (0, N_p - n_out)))
    b_p = b if N_p == n_out else jnp.pad(b, (0, N_p - n_out))
    b2 = b_p.astype(jnp.float32).reshape(1, N_p)

    grid = (B_p // tm, N_p // tn, K_p // tk)
    out_dtype = x.dtype

    if out_dtype == jnp.float32:
        kernel = functools.partial(
            _linear_kernel_inplace, activation=activation,
            cast_bf16=use_bf16_matmul)
        scratch_shapes = []
    else:
        kernel = functools.partial(
            _linear_kernel_scratch, activation=activation,
            cast_bf16=use_bf16_matmul)
        scratch_shapes = [pltpu.VMEM((tm, tn), jnp.float32)]

    out = pl.pallas_call(
        kernel,
        out_shape=jax.ShapeDtypeStruct((B_p, N_p), out_dtype),
        grid_spec=pltpu.PrefetchScalarGridSpec(
            num_scalar_prefetch=0,
            grid=grid,
            in_specs=[
                pl.BlockSpec((tm, tk), lambda i, j, k: (i, k)),   # x tile
                pl.BlockSpec((tk, tn), lambda i, j, k: (k, j)),   # W^T tile
                pl.BlockSpec((1, tn), lambda i, j, k: (0, j)),    # bias slice
            ],
            out_specs=pl.BlockSpec((tm, tn), lambda i, j, k: (i, j)),
            scratch_shapes=scratch_shapes,
        ),
        compiler_params=pltpu.CompilerParams(
            dimension_semantics=("parallel", "parallel", "arbitrary"),
            vmem_limit_bytes=40 * 1024 * 1024,
        ),
    )(x_p, wt_p, b2)

    if B_p != B or N_p != n_out:
        out = out[:B, :n_out]
    return out


def _reference(x, w, b, activation=None):
    y = x @ w.T + b
    if activation is not None:
        y = activation(y)
    return y


if __name__ == "__main__":
    key = jax.random.PRNGKey(0)

    # ---- Small case matching the module's typical MLP layer sizes ----
    kx, kw, kb = jax.random.split(key, 3)
    batch, n_in, n_out = 8, 32, 16
    bound = 1.0 / (n_in ** 0.5)
    x = jax.random.normal(kx, (batch, n_in), dtype=jnp.float32)
    w = jax.random.uniform(kw, (n_out, n_in), minval=-bound, maxval=bound,
                           dtype=jnp.float32)
    b = jax.random.uniform(kb, (n_out,), minval=-bound, maxval=bound,
                           dtype=jnp.float32)

    y_none = pallas_layer(x, w, b, activation=None)
    y_tanh = pallas_layer(x, w, b, activation=jnp.tanh)
    jax.block_until_ready(y_none)
    jax.block_until_ready(y_tanh)
    assert jnp.allclose(y_none, _reference(x, w, b, None), atol=1e-5, rtol=1e-5)
    assert jnp.allclose(y_tanh, _reference(x, w, b, jnp.tanh), atol=1e-5, rtol=1e-5)

    # ---- Larger case exercising the tiled (M, N, K) grid, divisor tile chooser
    # ---- (tk=768, no pad-to-1024) and the megacore grid-split guard.
    kx2, kw2, kb2 = jax.random.split(jax.random.PRNGKey(1), 3)
    B2, K2, N2 = 512, 768, 384
    bound2 = 1.0 / (K2 ** 0.5)
    x2 = jax.random.normal(kx2, (B2, K2), dtype=jnp.float32)
    w2 = jax.random.uniform(kw2, (N2, K2), minval=-bound2, maxval=bound2,
                            dtype=jnp.float32)
    b2 = jax.random.uniform(kb2, (N2,), minval=-bound2, maxval=bound2,
                            dtype=jnp.float32)

    y2 = pallas_layer(x2, w2, b2, activation=jnp.tanh)
    jax.block_until_ready(y2)
    assert jnp.allclose(y2, _reference(x2, w2, b2, jnp.tanh), atol=1e-3, rtol=1e-3)

    print("KERNEL_OK")
</pallas_src>

<mosaic_0001>
module attributes {stable_mosaic.version = 11 : i64} {
  func.func @_linear_kernel_inplace(%arg0: i32, %arg1: i32, %arg2: i32, %arg3: memref<8x128xf32, #tpu.memory_space<vmem>>, %arg4: memref<128x128xf32, #tpu.memory_space<vmem>>, %arg5: memref<1x128xf32, #tpu.memory_space<vmem>>, %arg6: memref<8x128xf32, #tpu.memory_space<vmem>>) attributes {dimension_semantics = [#tpu.dimension_semantics<parallel>, #tpu.dimension_semantics<parallel>, #tpu.dimension_semantics<arbitrary>], iteration_bounds = array<i64: 1, 1, 1>, scalar_prefetch = 0 : i64, scratch_operands = 0 : i64, tpu.core_type = #tpu.core_type<tc>, window_params = [{transform_indices = @transform_0, window_bounds = array<i64: 8, 128>}, {transform_indices = @transform_1, window_bounds = array<i64: 128, 128>}, {transform_indices = @transform_2, window_bounds = array<i64: 1, 128>}, {transform_indices = @transform_3, window_bounds = array<i64: 8, 128>}]} {
    %c0_i32 = arith.constant 0 : i32
    %0 = arith.cmpi eq, %arg2, %c0_i32 : i32
    %1 = arith.extui %0 : i1 to i32
    %c0_i32_0 = arith.constant 0 : i32
    %2 = arith.cmpi ne, %1, %c0_i32_0 : i32
    scf.if %2 {
      %c0_8 = arith.constant 0 : index
      %c0_9 = arith.constant 0 : index
      %9 = vector.load %arg5[%c0_8, %c0_9] : memref<1x128xf32, #tpu.memory_space<vmem>>, vector<1x128xf32>
      %10 = vector.shape_cast %9 : vector<1x128xf32> to vector<1x128xf32>
      %11 = vector.broadcast %10 : vector<1x128xf32> to vector<8x128xf32>
      %c0_10 = arith.constant 0 : index
      %c0_11 = arith.constant 0 : index
      %12 = vector.load %arg6[%c0_10, %c0_11] : memref<8x128xf32, #tpu.memory_space<vmem>>, vector<8x128xf32>
      tpu.vector_store %arg6[%c0_10, %c0_11], %11 {strides = array<i32>} : memref<8x128xf32, #tpu.memory_space<vmem>>, vector<8x128xf32>,
    } else {
    }
    %c0 = arith.constant 0 : index
    %c0_1 = arith.constant 0 : index
    %3 = vector.load %arg3[%c0, %c0_1] : memref<8x128xf32, #tpu.memory_space<vmem>>, vector<8x128xf32>
    %c0_2 = arith.constant 0 : index
    %c0_3 = arith.constant 0 : index
    %4 = vector.load %arg4[%c0_2, %c0_3] : memref<128x128xf32, #tpu.memory_space<vmem>>, vector<128x128xf32>
    %c0_4 = arith.constant 0 : index
    %c0_5 = arith.constant 0 : index
    %5 = vector.load %arg6[%c0_4, %c0_5] : memref<8x128xf32, #tpu.memory_space<vmem>>, vector<8x128xf32>
    %cst = arith.constant dense<0.000000e+00> : vector<8x128xf32>
    %6 = tpu.matmul %3, %4, %cst {dimension_numbers = #tpu.dot_dimension_numbers<[1], [0], [0], [1], [0, 0, 1, 1], [], []>} : vector<8x128xf32>, vector<128x128xf32>, vector<8x128xf32> -> vector<8x128xf32>
    %7 = arith.addf %5, %6 : vector<8x128xf32>
    %c0_6 = arith.constant 0 : index
    %c0_7 = arith.constant 0 : index
    %8 = vector.load %arg6[%c0_6, %c0_7] : memref<8x128xf32, #tpu.memory_space<vmem>>, vector<8x128xf32>
    tpu.vector_store %arg6[%c0_6, %c0_7], %7 {strides = array<i32>} : memref<8x128xf32, #tpu.memory_space<vmem>>, vector<8x128xf32>,
    return
  }
  func.func @transform_0(%arg0: i32, %arg1: i32, %arg2: i32) -> (i32, i32) {
    %c0_i32 = arith.constant 0 : i32
    return %arg0, %arg2 : i32, i32
  }
  func.func @transform_1(%arg0: i32, %arg1: i32, %arg2: i32) -> (i32, i32) {
    %c0_i32 = arith.constant 0 : i32
    return %arg2, %arg1 : i32, i32
  }
  func.func @transform_2(%arg0: i32, %arg1: i32, %arg2: i32) -> (i32, i32) {
    %c0_i32 = arith.constant 0 : i32
    %c0_i32_0 = arith.constant 0 : i32
    return %c0_i32, %arg1 : i32, i32
  }
  func.func @transform_3(%arg0: i32, %arg1: i32, %arg2: i32) -> (i32, i32) {
    %c0_i32 = arith.constant 0 : i32
    return %arg0, %arg1 : i32, i32
  }
}

</mosaic_0001>

<bundles_post_ra>
// kernel: tpu_custom_call.1
= control target key start
LH: loop header
LB: loop body
LE: loop exit
PB: predicated region body
PF: predicated region fallthrough
CT: control target
= control target key end

     0   :  { %8 = vsyncpa [#allocation3], 0  ;;  %s233_s0 = inlined_call_operand.hbm [shape: f32[8,128], index: 0, kind: input, shape index: {}]   ;;  %s234_s1 = inlined_call_operand.hbm [shape: f32[128,128], index: 1, kind: input, shape index: {}]   ;;  %s235_s2 = inlined_call_operand.vmem [shape: f32[1,128], index: 2, kind: input, shape index: {}]   ;;  %s236_s3 = inlined_call_operand.hbm [shape: f32[8,128], index: 3, kind: output, shape index: {}]  }
   0x1   :  { %9 = vsyncpa [#allocation6], 0 }
   0x2   :  { %10 = vsyncpa [#allocation4], 0  ;;  %s16_s14 = sshll.u32 %s233_s0, 4  ;;  %s196_s15 = smov [#allocation2]   ;;  %s17_s14 = int_to_ptr.hbm [resolvable:$true] %s16_s14 }
   0x3   :  { %s18_s16 = sshll.u32 %s196_s15, 4  ;;  %s26_s19 = sshll.u32 %s234_s1, 4  ;;  %s19_s16 = int_to_ptr.vmem [resolvable:$true] %s18_s16  ;;  %s27_s19 = int_to_ptr.hbm [resolvable:$true] %s26_s19 }
   0x4   :  { %21 = dma.hbm_to_vmem [thread:$0]  %s17_s14, 128, %s19_s16, [#allocation3]  }
   0x5   :  { %s197_s20 = smov [#allocation5]   ;;  %s198_s22 = smov 128  }
   0x6   :  { %s28_s21 = sshll.u32 %s197_s20, 4  ;;  %s199_s23 = smov 8   ;;  %s29_s21 = int_to_ptr.vmem [resolvable:$true] %s28_s21 }
   0x7   :  { %34 = dma.hbm_to_vmem [thread:$0]  %s27_s19, 2048, %s29_s21, [#allocation6], %s198_s22, %s198_s22, %s199_s23  }
   0x8   :  { %190 = dma.done.wait [#allocation3], 128  }
   0x9   :  { %191 = vsyncadd [#allocation3], 4294967168 }
   0xa   :  { %192 = dma.done.wait [#allocation6], 2048  }
   0xb   :  { %193 = vsyncadd [#allocation6], 4294965248  ;;  %v70_v0 = vld [vmem:[#allocation5 + $0x78] sm:$0xff]  ;;  %v69_v1 = vld [vmem:[#allocation5 + $0x70] sm:$0xff]  ;;  %s200_s24 = smov [#allocation7]   ;;  %s101_s28 = sshll.u32 %s236_s3, 4  ;;  %s102_s28 = int_to_ptr.hbm [resolvable:$true] %s101_s28 }
   0xc   :  { %72 = vmatpush.msra.mxu0 %v70_v0  ;;  %v68_v2 = vld [vmem:[#allocation5 + $0x68] sm:$0xff]  ;;  %v67_v3 = vld [vmem:[#allocation5 + $0x60] sm:$0xff]  ;;  %v66_v4 = vld [vmem:[#allocation5 + $0x58] sm:$0xff]  ;;  %s99_s25 = sshll.u32 %s200_s24, 4  ;;  %s100_s25 = int_to_ptr.vmem [resolvable:$true] %s99_s25 }
   0xd   :  { %v65_v5 = vld [vmem:[#allocation5 + $0x50] sm:$0xff]  ;;  %v64_v6 = vld [vmem:[#allocation5 + $0x48] sm:$0xff]  ;;  %v63_v7 = vld [vmem:[#allocation5 + $0x40] sm:$0xff] }
   0xe   :  { %73 = vmatpush.msra.mxu0 %v69_v1  ;;  %v62_v8 = vld [vmem:[#allocation5 + $0x38] sm:$0xff]  ;;  %v61_v9 = vld [vmem:[#allocation5 + $0x30] sm:$0xff]  ;;  %v60_v10 = vld [vmem:[#allocation5 + $0x28] sm:$0xff] }
   0xf   :  { %v59_v11 = vld [vmem:[#allocation5 + $0x20] sm:$0xff]  ;;  %v58_v12 = vld [vmem:[#allocation5 + $0x18] sm:$0xff]  ;;  %v57_v13 = vld [vmem:[#allocation5 + $0x10] sm:$0xff] }
  0x10   :  { %74 = vmatpush.msra.mxu0 %v68_v2  ;;  %v56_v14 = vld [vmem:[#allocation5 + $0x8] sm:$0xff]  ;;  %v55_v15 = vld [vmem:[#allocation5] sm:$0xff]  ;;  %v54_v16 = vld [vmem:[#allocation2] sm:$0xff] }
  0x11   :  { %v117_v17 = vld [vmem:[%s235_s2] ss:$0 sm:$0xff] }
  0x12   :  { %75 = vmatpush.msra.mxu0 %v67_v3 }
  0x14   :  { %76 = vmatpush.msra.mxu0 %v66_v4 }
  0x16   :  { %77 = vmatpush.msra.mxu0 %v65_v5 }
  0x18   :  { %78 = vmatpush.msra.mxu0 %v64_v6 }
  0x1a   :  { %79 = vmatpush.msra.mxu0 %v63_v7 }
  0x1c   :  { %80 = vmatpush.msra.mxu0 %v62_v8 }
  0x1e   :  { %81 = vmatpush.msra.mxu0 %v61_v9 }
  0x20   :  { %82 = vmatpush.msra.mxu0 %v60_v10 }
  0x22   :  { %83 = vmatpush.msra.mxu0 %v59_v11 }
  0x24   :  { %84 = vmatpush.msra.mxu0 %v58_v12 }
  0x26   :  { %85 = vmatpush.msra.mxu0 %v57_v13 }
  0x28   :  { %86 = vmatpush.msra.mxu0 %v56_v14 }
  0x2a   :  { %87 = vmatpush.msra.mxu0 %v55_v15 }
  0x2b   :  { %88 = vmatmul.f32.vlgmr.msra.gmra.mxu0 %v54_v16 }
  0xa8   :  { %v89_v18 = vpop.f32.mrf.mxu0 }
  0xa9   :  { %v92_v19 = vadd.f32 %v117_v17, %v89_v18 }
  0xab   :  { %93 = vst [vmem:[#allocation7] sm:$0xff] %v92_v19 }
  0xac   :  { %104 = dma.vmem_to_hbm [thread:$0]  %s100_s25, 128, %s102_s28, [#allocation4]  }
  0xad   :  { %194 = dma.done.wait [#allocation4], 128  }
  0xae   :  { %195 = vsyncadd [#allocation4], 4294967168 }
  0xaf   :  { %109 = vsyncpa [#allocation3], 1 }
  0xb0   :  { %110 = vsyncpa [#allocation6], 1 }
  0xb1   :  { %111 = vsyncpa [#allocation4], 1 }

</bundles_post_ra>
